<compile_context>
chip_gen: v6e
topology: v6e:2x2x1
jax: 0.10.0
libtpu: 0.0.40
codegen_flags: <defaults>
</compile_context>

<pallas_src>
import jax
import jax.numpy as jnp
from jax.experimental import pallas as pl
from jax.experimental.pallas import tpu as pltpu

_MAX_LANE = 1024                      # widest lane-dense width tried (multiple of 128)
_TARGET_BLOCK_ELEMS = 1024 * 1024     # ~4 MiB f32 per operand per grid step
_VMEM_LIMIT_BYTES = 32 * 1024 * 1024  # covers v5e default (16 MiB); <= v7x physical (64 MiB)


def _pmask_kernel(alpha_ref, x_ref, noisy_ref, o_ref):
    a = alpha_ref[0]                       # scalar PReLU slope from SMEM (read once)
    x = x_ref[...]
    n = noisy_ref[...]
    # PReLU with a single learnable slope.
    y = jnp.where(x > 0, x, a * x)
    # Straight-through hard clamp: forward value is clip(y, -1, 1).
    y = jnp.clip(y, -1.0, 1.0)
    o_ref[...] = y * n


def _pick_lane(total: int) -> int:
    """Largest multiple-of-128 power-of-two lane width that exactly divides `total`."""
    lane = _MAX_LANE
    while lane >= 128:
        if total % lane == 0:
            return lane
        lane //= 2
    return 0


def pmask(x: jax.Array, noisy: jax.Array, alpha: jax.Array) -> jax.Array:
    """x, noisy: arbitrary-shape float32 (e.g. (B, C, H, W)); alpha: (1,) float32.

    Note: alpha is a single scalar (nn.PReLU() default, num_parameters=1). A
    per-channel PReLU would need a different (channel-aware) layout.
    """
    assert x.shape == noisy.shape
    orig_shape = x.shape
    total = x.size

    lane = _pick_lane(total)
    padded = False
    if lane == 0:
        # TODO(synk): rare fallback (total not divisible by 128) pays ~2 extra HBM
        # passes for pad + slice; realistic model shapes hit the pad-free path above.
        lane = 128
        rows = pl.cdiv(total, lane)
        pad = rows * lane - total
        xf = jnp.pad(jnp.ravel(x), (0, pad))
        nf = jnp.pad(jnp.ravel(noisy), (0, pad))
        padded = True
    else:
        rows = total // lane
        xf = jnp.ravel(x)        # bitcast, no copy
        nf = jnp.ravel(noisy)    # bitcast, no copy

    x2 = xf.reshape(rows, lane)
    n2 = nf.reshape(rows, lane)

    # ~4 MiB per operand per grid step; multiple of 8 rows whenever it tiles.
    block_rows = _TARGET_BLOCK_ELEMS // lane
    if block_rows >= rows:
        block_rows = rows        # single block equal to full array dims (always legal)
    grid = (pl.cdiv(rows, block_rows),)   # final ragged block is masked by Pallas

    out2 = pl.pallas_call(
        _pmask_kernel,
        out_shape=jax.ShapeDtypeStruct((rows, lane), x.dtype),
        grid=grid,
        in_specs=[
            pl.BlockSpec(memory_space=pltpu.SMEM),                # alpha scalar
            pl.BlockSpec((block_rows, lane), lambda i: (i, 0)),   # x tile
            pl.BlockSpec((block_rows, lane), lambda i: (i, 0)),   # noisy tile
        ],
        out_specs=pl.BlockSpec((block_rows, lane), lambda i: (i, 0)),
        compiler_params=pltpu.CompilerParams(
            dimension_semantics=("parallel",),
            vmem_limit_bytes=_VMEM_LIMIT_BYTES,
        ),
    )(alpha, x2, n2)

    out = out2.reshape(-1)
    if padded:
        out = out[:total]
    return out.reshape(orig_shape)


def pmask_ref(x, noisy, alpha):
    a = alpha[0]
    y = jnp.where(x > 0, x, a * x)
    y = jnp.where(jnp.abs(y) <= 1.0, y, jnp.sign(y))
    return y * noisy


if __name__ == "__main__":
    key = jax.random.PRNGKey(0)
    k1, k2, k3, k4, k5, k6 = jax.random.split(key, 6)

    alpha = jnp.array([0.25], dtype=jnp.float32)   # nn.PReLU() default init

    # 1) Small test consistent with the module (NCHW); total divisible by 1024,
    #    single-block pad-free path.
    B, C, H, W = 2, 4, 16, 16
    x = jax.random.normal(k1, (B, C, H, W), dtype=jnp.float32) * 2.0
    noisy = jax.random.normal(k2, (B, C, H, W), dtype=jnp.float32)
    out = jax.block_until_ready(pmask(x, noisy, alpha))
    ref = pmask_ref(x, noisy, alpha)
    assert out.shape == (B, C, H, W)
    assert jnp.allclose(out, ref, atol=1e-6, rtol=1e-6), "mismatch vs reference (small)"

    # 2) Non-1024-multiple spatial size (divisible by 128): exercises the narrower
    #    lane-dense, pad-free path (no host-side pad/slice).
    B2, C2, H2, W2 = 2, 8, 200, 161
    x2 = jax.random.normal(k3, (B2, C2, H2, W2), dtype=jnp.float32) * 2.0
    noisy2 = jax.random.normal(k4, (B2, C2, H2, W2), dtype=jnp.float32)
    out2 = jax.block_until_ready(pmask(x2, noisy2, alpha))
    ref2 = pmask_ref(x2, noisy2, alpha)
    assert out2.shape == (B2, C2, H2, W2)
    assert jnp.allclose(out2, ref2, atol=1e-6, rtol=1e-6), "mismatch vs reference (ragged lanes)"

    # 3) Multi-step grid with a ragged final row block (Pallas-masked), pad-free.
    B3, C3, H3, W3 = 2, 4, 257, 512       # total = 1,052,672 = 1028 * 1024
    x3 = jax.random.normal(k5, (B3, C3, H3, W3), dtype=jnp.float32) * 2.0
    noisy3 = jax.random.normal(k6, (B3, C3, H3, W3), dtype=jnp.float32)
    out3 = jax.block_until_ready(pmask(x3, noisy3, alpha))
    ref3 = pmask_ref(x3, noisy3, alpha)
    assert out3.shape == (B3, C3, H3, W3)
    assert jnp.allclose(out3, ref3, atol=1e-6, rtol=1e-6), "mismatch vs reference (ragged rows)"

    print("KERNEL_OK")
</pallas_src>

<mosaic_0001>
module attributes {stable_mosaic.version = 11 : i64} {
  func.func @_pmask_kernel(%arg0: i32, %arg1: memref<1xf32, #tpu.memory_space<smem>>, %arg2: memref<2x1024xf32, #tpu.memory_space<vmem>>, %arg3: memref<2x1024xf32, #tpu.memory_space<vmem>>, %arg4: memref<2x1024xf32, #tpu.memory_space<vmem>>) attributes {dimension_semantics = [#tpu.dimension_semantics<parallel>], iteration_bounds = array<i64: 1>, scalar_prefetch = 0 : i64, scratch_operands = 0 : i64, tpu.core_type = #tpu.core_type<tc>, window_params = [{transform_indices = @transform_0, window_bounds = array<i64: 1>}, {transform_indices = @transform_1, window_bounds = array<i64: 2, 1024>}, {transform_indices = @transform_2, window_bounds = array<i64: 2, 1024>}, {transform_indices = @transform_3, window_bounds = array<i64: 2, 1024>}]} {
    %c0 = arith.constant 0 : index
    %0 = memref.load %arg1[%c0] : memref<1xf32, #tpu.memory_space<smem>>
    %c0_0 = arith.constant 0 : index
    %c0_1 = arith.constant 0 : index
    %1 = vector.load %arg2[%c0_0, %c0_1] : memref<2x1024xf32, #tpu.memory_space<vmem>>, vector<2x1024xf32>
    %c0_2 = arith.constant 0 : index
    %c0_3 = arith.constant 0 : index
    %2 = vector.load %arg3[%c0_2, %c0_3] : memref<2x1024xf32, #tpu.memory_space<vmem>>, vector<2x1024xf32>
    %cst = arith.constant 0.000000e+00 : f32
    %3 = vector.broadcast %cst : f32 to vector<2x1024xf32>
    %4 = arith.cmpf ogt, %1, %3 : vector<2x1024xf32>
    %5 = vector.broadcast %0 : f32 to vector<2x1024xf32>
    %6 = arith.mulf %5, %1 : vector<2x1024xf32>
    %7 = arith.select %4, %1, %6 : vector<2x1024xi1>, vector<2x1024xf32>
    %cst_4 = arith.constant -1.000000e+00 : f32
    %cst_5 = arith.constant 1.000000e+00 : f32
    %8 = vector.broadcast %cst_4 : f32 to vector<2x1024xf32>
    %9 = arith.maximumf %8, %7 : vector<2x1024xf32>
    %10 = vector.broadcast %cst_5 : f32 to vector<2x1024xf32>
    %11 = arith.minimumf %10, %9 : vector<2x1024xf32>
    %12 = arith.mulf %11, %2 : vector<2x1024xf32>
    %c0_6 = arith.constant 0 : index
    %c0_7 = arith.constant 0 : index
    %13 = vector.load %arg4[%c0_6, %c0_7] : memref<2x1024xf32, #tpu.memory_space<vmem>>, vector<2x1024xf32>
    tpu.vector_store %arg4[%c0_6, %c0_7], %12 {strides = array<i32>} : memref<2x1024xf32, #tpu.memory_space<vmem>>, vector<2x1024xf32>,
    return
  }
  func.func @transform_0(%arg0: i32) -> i32 {
    %c0_i32 = arith.constant 0 : i32
    %c0_i32_0 = arith.constant 0 : i32
    return %c0_i32 : i32
  }
  func.func @transform_1(%arg0: i32) -> (i32, i32) {
    %c0_i32 = arith.constant 0 : i32
    %c0_i32_0 = arith.constant 0 : i32
    return %arg0, %c0_i32 : i32, i32
  }
  func.func @transform_2(%arg0: i32) -> (i32, i32) {
    %c0_i32 = arith.constant 0 : i32
    %c0_i32_0 = arith.constant 0 : i32
    return %arg0, %c0_i32 : i32, i32
  }
  func.func @transform_3(%arg0: i32) -> (i32, i32) {
    %c0_i32 = arith.constant 0 : i32
    %c0_i32_0 = arith.constant 0 : i32
    return %arg0, %c0_i32 : i32, i32
  }
}

</mosaic_0001>

<bundles_post_ra>
// kernel: tpu_custom_call.1
= control target key start
LH: loop header
LB: loop body
LE: loop exit
PB: predicated region body
PF: predicated region fallthrough
CT: control target
= control target key end

     0   :  { %9 = vsyncpa [#allocation4], 0  ;;  %s182_s0 = inlined_call_operand.<no memory space> [shape: f32[1], index: 0, kind: input, shape index: {}]   ;;  %s183_s1 = inlined_call_operand.hbm [shape: f32[2,1024], index: 1, kind: input, shape index: {}]   ;;  %s184_s2 = inlined_call_operand.hbm [shape: f32[2,1024], index: 2, kind: input, shape index: {}]   ;;  %s185_s3 = inlined_call_operand.hbm [shape: f32[2,1024], index: 3, kind: output, shape index: {}]  }
   0x1   :  { %10 = vsyncpa [#allocation7], 0 }
   0x2   :  { %11 = vsyncpa [#allocation5], 0  ;;  %s147_s12 = smov [#allocation3]   ;;  %s148_s14 = smov [#allocation6]  }
   0x3   :  { %s20_s13 = sshll.u32 %s147_s12, 4  ;;  %s30_s15 = sshll.u32 %s148_s14, 4  ;;  %s21_s13 = int_to_ptr.vmem [resolvable:$true] %s20_s13  ;;  %s31_s15 = int_to_ptr.vmem [resolvable:$true] %s30_s15 }
   0x4   :  { %s89_s16 = scalar_lea.vmem %s21_s13, 256  ;;  %p94_p1 = scmp.lt.s32.totalorder %s21_s13, %s21_s13 }
   0x5   :  { %p90_p0 = scmp.ne.s32.totalorder %s21_s13, %s89_s16  ;;  %p95_p2 = scmp.lt.s32.totalorder %s89_s16, %s89_s16 }
   0x7   :  { %p96_p3 = por %p95_p2, %p94_p1 }
   0x9   :  { %p97_p4 = pnand %p96_p3, %p90_p0 }
   0xb   :  { %100 = shalt.err (!%p97_p4)
}
   0xc   :  { %23 = dma.hbm_to_vmem [thread:$0]  %s183_s1, 256, %s21_s13, [#allocation4]  }
   0xd   :  { %s109_s19 = scalar_lea.vmem %s31_s15, 256  ;;  %p114_p6 = scmp.lt.s32.totalorder %s31_s15, %s31_s15 }
   0xe   :  { %p110_p5 = scmp.ne.s32.totalorder %s31_s15, %s109_s19  ;;  %p115_p7 = scmp.lt.s32.totalorder %s109_s19, %s109_s19 }
  0x10   :  { %p116_p8 = por %p115_p7, %p114_p6 }
  0x12   :  { %p117_p9 = pnand %p116_p8, %p110_p5 }
  0x14   :  { %120 = shalt.err (!%p117_p9)
}
  0x15   :  { %33 = dma.hbm_to_vmem [thread:$0]  %s184_s2, 256, %s31_s15, [#allocation7]  }
  0x16   :  { %141 = dma.done.wait [#allocation4], 256  }
  0x17   :  { %142 = vsyncadd [#allocation4], 4294967040 }
  0x18   :  { %143 = dma.done.wait [#allocation7], 256  }
  0x19   :  { %144 = vsyncadd [#allocation7], 4294967040  ;;  %v47_v0 = vstv %s182_s0  ;;  %v41_v1 = vld [vmem:[#allocation3] sm:$0xff]  ;;  %v42_v2 = vld [vmem:[#allocation3 + $0x8] sm:$0xff]  ;;  %s149_s1 = smov [#allocation8]  }
  0x1a   :  { %vm45_vm0 = vcmp.gt.f32.partialorder %v41_v1, 0.0  ;;  %v48_v3 = vmul.f32 %v47_v0, %v41_v1  ;;  %vm46_vm1 = vcmp.gt.f32.partialorder %v42_v2, 0.0  ;;  %v49_v4 = vmul.f32 %v47_v0, %v42_v2  ;;  %v43_v5 = vld [vmem:[#allocation6] sm:$0xff]  ;;  %v44_v7 = vld [vmem:[#allocation6 + $0x8] sm:$0xff]  ;;  %s66_s2 = sshll.u32 %s149_s1, 4  ;;  %s67_s2 = int_to_ptr.vmem [resolvable:$true] %s66_s2 }
  0x1b   :  { %s121_s0 = scalar_lea.vmem %s67_s2, 256  ;;  %p126_p11 = scmp.lt.s32.totalorder %s67_s2, %s67_s2 }
  0x1c   :  { %v50_v6 = vsel %vm45_vm0, %v41_v1, %v48_v3  ;;  %v51_v8 = vsel %vm46_vm1, %v42_v2, %v49_v4  ;;  %p122_p10 = scmp.ne.s32.totalorder %s67_s2, %s121_s0  ;;  %p127_p12 = scmp.lt.s32.totalorder %s121_s0, %s121_s0 }
  0x1d   :  { %v76_v9 = vclamps-f32 %v50_v6, 1.0  ;;  %v77_v10 = vclamps-f32 %v51_v8, 1.0 }
  0x1e   :  { %p128_p13 = por %p127_p12, %p126_p11 }
  0x1f   :  { %v56_v11 = vmul.f32 %v76_v9, %v43_v5  ;;  %v57_v12 = vmul.f32 %v77_v10, %v44_v7 }
  0x20   :  { %p129_p0 = pnand %p128_p13, %p122_p10 }
  0x21   :  { %58 = vst [vmem:[#allocation8] sm:$0xff] %v56_v11  ;;  %59 = vst [vmem:[#allocation8 + $0x8] sm:$0xff] %v57_v12 }
  0x22   :  { %132 = shalt.err (!%p129_p0)
}
  0x23   :  { %69 = dma.vmem_to_hbm [thread:$0]  %s67_s2, 256, %s185_s3, [#allocation5]  }
  0x24   :  { %145 = dma.done.wait [#allocation5], 256  }
  0x25   :  { %146 = vsyncadd [#allocation5], 4294967040 }
  0x26   :  { %73 = vsyncpa [#allocation4], 1 }
  0x27   :  { %74 = vsyncpa [#allocation7], 1 }
  0x28   :  { %75 = vsyncpa [#allocation5], 1 }

</bundles_post_ra>
